<compile_context>
chip_gen: v7x
topology: tpu7x:2x2x1
jax: 0.10.0
libtpu: 0.0.40
codegen_flags: <defaults>
</compile_context>

<pallas_src>
import jax
import jax.numpy as jnp
from jax.experimental import pallas as pl
from jax.experimental.pallas import tpu as pltpu


def _round_up(x, m):
    return ((x + m - 1) // m) * m


def _vmem_capacity_bytes():
    try:
        return int(pltpu.get_tpu_info().vmem_capacity_bytes)
    except Exception:
        return 64 * 1024 * 1024  # conservative fallback (v7x per-TC VMEM)


def _conv_bn_relu_kernel(x_ref, w_ref, s_ref, b_ref, o_ref):
    # x_ref: (1, M_tile, K_pad) bf16 im2col patches
    # w_ref: (K_pad, TC)        bf16 conv weight (unscaled)
    # s_ref: (1, TC)            f32  BN scale  = gamma / sqrt(var + eps)
    # b_ref: (1, TC)            f32  BN bias   = beta - mean * scale
    # o_ref: (1, M_tile, TC)    bf16 output tile
    acc = jnp.dot(x_ref[0], w_ref[...], preferred_element_type=jnp.float32)
    y = acc * s_ref[...] + b_ref[...]
    o_ref[0] = jnp.maximum(y, 0.0).astype(o_ref.dtype)


def _block_bytes(m_tile, k_pad, tc):
    """Per-grid-step VMEM footprint (double-buffered blocks + f32 dot temporary)."""
    return (2 * m_tile * k_pad * 2     # input block, bf16, 2 buffers
            + 2 * m_tile * tc * 2      # output block, bf16, 2 buffers
            + 2 * k_pad * tc * 2       # weight block, bf16 (conservatively 2 buffers)
            + 4 * tc * 4               # scale + bias blocks (2 buffers each), f32
            + m_tile * tc * 4)         # f32 matmul-result temporary


def _pick_row_tile(h_out, w_out, k_pad, tc, budget_bytes, want_spatial_tiles=1):
    """Largest TH with H_out % TH == 0 and (TH*W_out) % 8 == 0 fitting the budget."""
    legal = [th for th in range(1, h_out + 1)
             if h_out % th == 0 and (th * w_out) % 8 == 0]
    if not legal:
        return h_out                    # full-extent block is always layout-legal
    fitting = [th for th in legal
               if _block_bytes(th * w_out, k_pad, tc) <= budget_bytes]
    if not fitting:
        return min(legal)               # smallest legal tile as last resort
    best = max(fitting)
    # v7x megacore: prefer >=2 spatial tiles when the rest of the grid is degenerate.
    if want_spatial_tiles > 1 and h_out // best < want_spatial_tiles:
        pref = [th for th in fitting if h_out // th >= want_spatial_tiles]
        if pref:
            best = max(pref)
    return best


def conv_bn_relu(x_nchw, w_oihw, gamma, beta, running_mean, running_var,
                 *, eps=1e-5, padding=1):
    """Fused Conv2d(3x3, stride 1, bias=False) + BatchNorm2d(eval) + ReLU. NCHW in/out."""
    N, C_in, H, W = x_nchw.shape
    C_out, _, KH, KW = w_oihw.shape

    # ---- im2col prep (plain JAX glue around the kernel) ------------------------------
    x = jnp.transpose(x_nchw, (0, 2, 3, 1)).astype(jnp.bfloat16)      # NCHW -> NHWC
    x = jnp.pad(x, ((0, 0), (padding, padding), (padding, padding), (0, 0)))
    H_out = H + 2 * padding - KH + 1
    W_out = W + 2 * padding - KW + 1
    taps = [x[:, ky:ky + H_out, kx:kx + W_out, :]
            for ky in range(KH) for kx in range(KW)]
    patches = jnp.concatenate(taps, axis=-1)          # (N, H_out, W_out, KH*KW*C_in)

    K = KH * KW * C_in
    K_pad = _round_up(K, 128)
    C_pad = _round_up(C_out, 128)

    patches = jnp.pad(patches, ((0, 0), (0, 0), (0, 0), (0, K_pad - K)))
    patches = patches.reshape(N, H_out * W_out, K_pad)                # (N, M, K_pad)

    # Weight (Cout,Cin,KH,KW) -> (K, Cout), bf16, padded.  BN applied post-matmul in
    # f32 (scale/bias vectors) instead of folding into bf16 weights (precision).
    w_mat = jnp.transpose(w_oihw, (2, 3, 1, 0)).reshape(K, C_out).astype(jnp.bfloat16)
    w_mat = jnp.pad(w_mat, ((0, K_pad - K), (0, C_pad - C_out)))
    scale = (gamma / jnp.sqrt(running_var + eps)).astype(jnp.float32)
    bias = (beta - running_mean * scale).astype(jnp.float32)
    s_vec = jnp.pad(scale, (0, C_pad - C_out)).reshape(1, C_pad)
    b_vec = jnp.pad(bias, (0, C_pad - C_out)).reshape(1, C_pad)

    # ---- tiling (generation-aware VMEM budget) ----------------------------------------
    vmem_cap = _vmem_capacity_bytes()
    # Largest output-channel tile (<=512, multiple of 128) dividing C_pad -> weight
    # effectively resident; its grid axis is outside the spatial (innermost) axis.
    TC = next(tc for tc in (512, 384, 256, 128) if tc <= C_pad and C_pad % tc == 0)
    n_c = C_pad // TC

    budget = int(0.55 * vmem_cap)              # headroom for compiler-internal scratch
    want_spatial = 1 if N * n_c >= 2 else 2    # keep >=2 parallel iters for v7x
    TH = _pick_row_tile(H_out, W_out, K_pad, TC, budget, want_spatial)
    M_tile = TH * W_out
    M = H_out * W_out
    n_m = M // M_tile

    need = _block_bytes(M_tile, K_pad, TC)
    vmem_limit = int(min(max(need + (8 << 20), 32 << 20), int(0.85 * vmem_cap)))

    cost = pl.CostEstimate(
        flops=2 * N * M * K_pad * C_pad,
        transcendentals=0,
        bytes_accessed=(patches.size * 2 + w_mat.size * 2 + 2 * C_pad * 4
                        + N * M * C_pad * 2))

    out_flat = pl.pallas_call(
        _conv_bn_relu_kernel,
        out_shape=jax.ShapeDtypeStruct((N, M, C_pad), jnp.bfloat16),
        grid_spec=pltpu.PrefetchScalarGridSpec(
            num_scalar_prefetch=0,
            grid=(N, n_c, n_m),     # weight/scale/bias depend only on j (not innermost)
            in_specs=[
                pl.BlockSpec((1, M_tile, K_pad), lambda b, j, i: (b, i, 0)),
                pl.BlockSpec((K_pad, TC), lambda b, j, i: (0, j)),
                pl.BlockSpec((1, TC), lambda b, j, i: (0, j)),
                pl.BlockSpec((1, TC), lambda b, j, i: (0, j)),
            ],
            out_specs=pl.BlockSpec((1, M_tile, TC), lambda b, j, i: (b, i, j)),
        ),
        compiler_params=pltpu.CompilerParams(
            dimension_semantics=("parallel", "parallel", "parallel"),
            vmem_limit_bytes=vmem_limit),
        cost_estimate=cost,
    )(patches, w_mat, s_vec, b_vec)

    out = out_flat.reshape(N, H_out, W_out, C_pad)[..., :C_out]
    # TODO(synk): in a full network keep activations in this padded NHWC/lane-packed
    #             layout between layers instead of round-tripping through NCHW.
    return jnp.transpose(out, (0, 3, 1, 2))            # NHWC -> NCHW (bf16)


def _reference(x_nchw, w_oihw, gamma, beta, running_mean, running_var, eps=1e-5):
    y = jax.lax.conv_general_dilated(
        x_nchw, w_oihw, window_strides=(1, 1), padding=((1, 1), (1, 1)),
        dimension_numbers=("NCHW", "OIHW", "NCHW"))
    scale = gamma / jnp.sqrt(running_var + eps)
    bias = beta - running_mean * scale
    y = y * scale[None, :, None, None] + bias[None, :, None, None]
    return jnp.maximum(y, 0.0)


if __name__ == "__main__":
    key = jax.random.PRNGKey(0)
    k_x, k_w = jax.random.split(key)

    N, C_in, H, W = 2, 4, 16, 16
    C_out, KH, KW = 8, 3, 3

    x = jax.random.normal(k_x, (N, C_in, H, W), dtype=jnp.float32)

    # Conv weight: kaiming_normal_ with a=1 -> gain = sqrt(2/(1+1)) = 1,
    # std = 1/sqrt(fan_in), fan_in = C_in*KH*KW. Bias-free conv.
    fan_in = C_in * KH * KW
    w = jax.random.normal(k_w, (C_out, C_in, KH, KW), dtype=jnp.float32) / jnp.sqrt(
        jnp.float32(fan_in))

    # BatchNorm2d default init/state: weight=1, bias=0, running_mean=0, running_var=1.
    gamma = jnp.ones((C_out,), jnp.float32)
    beta = jnp.zeros((C_out,), jnp.float32)
    running_mean = jnp.zeros((C_out,), jnp.float32)
    running_var = jnp.ones((C_out,), jnp.float32)

    out = conv_bn_relu(x, w, gamma, beta, running_mean, running_var)
    out = jax.block_until_ready(out)

    ref = _reference(x, w, gamma, beta, running_mean, running_var)
    assert out.shape == (N, C_out, H, W)
    # bf16 activations/weights/output with f32 accumulation: loose tolerance vs f32 ref.
    assert jnp.allclose(out.astype(jnp.float32), ref, atol=3e-2, rtol=3e-2)

    print("KERNEL_OK")
</pallas_src>

<mosaic_0001>
module attributes {stable_mosaic.version = 11 : i64} {
  func.func @_conv_bn_relu_kernel(%arg0: i32, %arg1: i32, %arg2: i32, %arg3: memref<1x256x128xbf16, #tpu.memory_space<vmem>>, %arg4: memref<128x128xbf16, #tpu.memory_space<vmem>>, %arg5: memref<1x128xf32, #tpu.memory_space<vmem>>, %arg6: memref<1x128xf32, #tpu.memory_space<vmem>>, %arg7: memref<1x256x128xbf16, #tpu.memory_space<vmem>>) attributes {dimension_semantics = [#tpu.dimension_semantics<parallel>, #tpu.dimension_semantics<parallel>, #tpu.dimension_semantics<parallel>], iteration_bounds = array<i64: 2, 1, 1>, scalar_prefetch = 0 : i64, scratch_operands = 0 : i64, tpu.core_type = #tpu.core_type<tc>, window_params = [{transform_indices = @transform_0, window_bounds = array<i64: 1, 256, 128>}, {transform_indices = @transform_1, window_bounds = array<i64: 128, 128>}, {transform_indices = @transform_2, window_bounds = array<i64: 1, 128>}, {transform_indices = @transform_3, window_bounds = array<i64: 1, 128>}, {transform_indices = @transform_4, window_bounds = array<i64: 1, 256, 128>}]} {
    %c0 = arith.constant 0 : index
    %c0_0 = arith.constant 0 : index
    %c0_1 = arith.constant 0 : index
    %0 = vector.load %arg3[%c0, %c0_0, %c0_1] : memref<1x256x128xbf16, #tpu.memory_space<vmem>>, vector<1x256x128xbf16>
    %1 = vector.shape_cast %0 : vector<1x256x128xbf16> to vector<256x128xbf16>
    %c0_2 = arith.constant 0 : index
    %c0_3 = arith.constant 0 : index
    %2 = vector.load %arg4[%c0_2, %c0_3] : memref<128x128xbf16, #tpu.memory_space<vmem>>, vector<128x128xbf16>
    %cst = arith.constant dense<0.000000e+00> : vector<256x128xf32>
    %3 = tpu.matmul %1, %2, %cst {dimension_numbers = #tpu.dot_dimension_numbers<[1], [0], [0], [1], [0, 0, 1, 1], [], []>} : vector<256x128xbf16>, vector<128x128xbf16>, vector<256x128xf32> -> vector<256x128xf32>
    %c0_4 = arith.constant 0 : index
    %c0_5 = arith.constant 0 : index
    %4 = vector.load %arg5[%c0_4, %c0_5] : memref<1x128xf32, #tpu.memory_space<vmem>>, vector<1x128xf32>
    %5 = vector.broadcast %4 : vector<1x128xf32> to vector<256x128xf32>
    %6 = arith.mulf %3, %5 : vector<256x128xf32>
    %c0_6 = arith.constant 0 : index
    %c0_7 = arith.constant 0 : index
    %7 = vector.load %arg6[%c0_6, %c0_7] : memref<1x128xf32, #tpu.memory_space<vmem>>, vector<1x128xf32>
    %8 = vector.broadcast %7 : vector<1x128xf32> to vector<256x128xf32>
    %9 = arith.addf %6, %8 : vector<256x128xf32>
    %cst_8 = arith.constant 0.000000e+00 : f32
    %10 = vector.broadcast %cst_8 : f32 to vector<256x128xf32>
    %11 = arith.maximumf %9, %10 : vector<256x128xf32>
    %12 = arith.truncf %11 : vector<256x128xf32> to vector<256x128xbf16>
    %c0_9 = arith.constant 0 : index
    %c0_10 = arith.constant 0 : index
    %c0_11 = arith.constant 0 : index
    %13 = vector.load %arg7[%c0_9, %c0_10, %c0_11] : memref<1x256x128xbf16, #tpu.memory_space<vmem>>, vector<1x256x128xbf16>
    %14 = vector.shape_cast %13 : vector<1x256x128xbf16> to vector<256x128xbf16>
    %15 = vector.shape_cast %12 : vector<256x128xbf16> to vector<1x256x128xbf16>
    tpu.vector_store %arg7[%c0_9, %c0_10, %c0_11], %15 {strides = array<i32>} : memref<1x256x128xbf16, #tpu.memory_space<vmem>>, vector<1x256x128xbf16>,
    return
  }
  func.func @transform_0(%arg0: i32, %arg1: i32, %arg2: i32) -> (i32, i32, i32) {
    %c0_i32 = arith.constant 0 : i32
    %c0_i32_0 = arith.constant 0 : i32
    return %arg0, %arg2, %c0_i32 : i32, i32, i32
  }
  func.func @transform_1(%arg0: i32, %arg1: i32, %arg2: i32) -> (i32, i32) {
    %c0_i32 = arith.constant 0 : i32
    %c0_i32_0 = arith.constant 0 : i32
    return %c0_i32, %arg1 : i32, i32
  }
  func.func @transform_2(%arg0: i32, %arg1: i32, %arg2: i32) -> (i32, i32) {
    %c0_i32 = arith.constant 0 : i32
    %c0_i32_0 = arith.constant 0 : i32
    return %c0_i32, %arg1 : i32, i32
  }
  func.func @transform_3(%arg0: i32, %arg1: i32, %arg2: i32) -> (i32, i32) {
    %c0_i32 = arith.constant 0 : i32
    %c0_i32_0 = arith.constant 0 : i32
    return %c0_i32, %arg1 : i32, i32
  }
  func.func @transform_4(%arg0: i32, %arg1: i32, %arg2: i32) -> (i32, i32, i32) {
    %c0_i32 = arith.constant 0 : i32
    return %arg0, %arg2, %arg1 : i32, i32, i32
  }
}

</mosaic_0001>

<bundles_post_ra>
// kernel: tpu_custom_call.1
= control target key start
LH: loop header
LB: loop body
LE: loop exit
PB: predicated region body
PF: predicated region fallthrough
CT: control target
= control target key end

     0   :  { %9 = vsyncpa [#allocation3], 0  ;;  %s1976_s0 = inlined_call_operand.hbm [shape: bf16[2,256,128], index: 0, kind: input, shape index: {}]   ;;  %s1977_s1 = inlined_call_operand.hbm [shape: bf16[128,128], index: 1, kind: input, shape index: {}]   ;;  %s1978_s2 = inlined_call_operand.vmem [shape: f32[1,128], index: 2, kind: input, shape index: {}]   ;;  %s1979_s3 = inlined_call_operand.vmem [shape: f32[1,128], index: 3, kind: input, shape index: {}]   ;;  %s1980_s4 = inlined_call_operand.hbm [shape: bf16[2,256,128], index: 4, kind: output, shape index: {}]  }
   0x1   :  { %11 = vsyncpa [#allocation3 + $0x1], 0 }
   0x2   :  { %12 = vsyncpa [#allocation6], 0 }
   0x3   :  { %13 = vsyncpa [#allocation4], 0 }
   0x4   :  { %15 = vsyncpa [#allocation4 + $0x1], 0  ;;  %s1636_s15 = smov 0   ;;  %s1638_s16 = smov 0  }
   0x5   :  { %s1640_s17 = smov 0   ;;  %s1642_s18 = smov 0  }
   0x6   :  { %s1644_s19 = smov 0   ;;  %s1646_s20 = smov 0  }
   0x7 LB: > { %s1063_s21 = sadd.s32 4294967295, %s1602_s20   ;;  %s1064_s22 = sadd.s32 4294967294, %s1602_s20   ;;  %s1602_s20 = sphi %s1646_s20, %s21_s20   ;;  %s1598_s19 = sphi %s1644_s19, %s2004_s19   ;;  %s1594_s18 = sphi %s1642_s18, %s2003_s18   ;;  %s1590_s17 = sphi %s1640_s17, %s2002_s17   ;;  %s1586_s16 = sphi %s1638_s16, %s2001_s16   ;;  %s1582_s15 = sphi %s1636_s15, %s2000_s15  }
   0x8   : > { %p62_p0 = scmp.ne.s32.totalorder %s1586_s16, %s1582_s15  ;;  %p1670_p1 = scmp.eq.s32.totalorder %s1063_s21, 0 }
   0x9   : > { %p1674_p2 = scmp.eq.s32.totalorder %s1063_s21, 1  ;;  %p174_p3 = scmp.eq.s32.totalorder %s1064_s22, 1 }
   0xa   : > { %s1985_s23 = scalar_select %p1670_p1, 1, 0 }
   0xb   : > { %s1986_s24 = scalar_select %p1674_p2, 1, 0 }
   0xc   : > { %p1680_p4 = por %p1670_p1, %p62_p0  ;;  %p1065_p5 = scmp.ge.s32.totalorder %s1602_s20, 1 }
   0xd   : > { %p1685_p6 = por %p174_p3, %p62_p0  ;;  %p181_p7 = scmp.lt.s32.totalorder %s1602_s20, 3 }
   0xe   : > { %s1987_s25 = scalar_select %p1680_p4, 1, 0 }
   0xf   : > { %s1988_s26 = scalar_select %p1685_p6, 1, 0 }
  0x10   : > { %p1690_p8 = pnand %p1065_p5, %p181_p7  ;;  %s1604_s28 = smov [#allocation5]  }
  0x11   : > { %s195_s29 = sshll.u32 %s1604_s28, 4  ;;  %s40_s5 = sadd.s32 1, %s1598_s19  ;;  %s196_s29 = int_to_ptr.vmem [resolvable:$true] %s195_s29 }
  0x12   : > { %s1989_s27 = scalar_select %p1690_p8, 1, 0 }
  0x13   : > { %p1365_p9 = pneg %p1690_p8  ;;  %s1458_s8 = scalar_lea.hbm %s1977_s1, 1024 }
  0x14   : > { %p1459_p12 = scmp.ne.s32.totalorder %s1977_s1, %s1458_s8  ;;  %p1465_p5 = scmp.lt.u32.totalorder %s1458_s8, %s1977_s1 }
  0x15   : > { %p1699_p11 = pnand %p1365_p9, %p1670_p1 }
  0x17   : > { %p1460_p13 = pneg %p1699_p11 }
  0x19   : > { %p1461_p0 = pnand %p1460_p13, %p1459_p12 }
  0x1b   : > { %p1462_p3 = pneg %p1461_p0 }
  0x1d   : > { %p1467_p7 = pnand %p1465_p5, %p1462_p3 }
  0x1f   : > { %1470 = shalt.err (!%p1467_p7)
}
  0x20   : > { %s1471_s13 = scalar_lea.vmem %s196_s29, 1024  ;;  %p1479_p1 = scmp.lt.s32.totalorder %s196_s29, %s196_s29 }
  0x21   : > { %p1472_p9 = scmp.ne.s32.totalorder %s196_s29, %s1471_s13  ;;  %p1480_p4 = scmp.lt.s32.totalorder %s1471_s13, %s1471_s13 }
  0x23   : > { %p1474_p10 = pnand %p1472_p9, %p1460_p13  ;;  %p1481_p8 = por %p1480_p4, %p1479_p1 }
  0x25   : > { %p1475_p6 = pneg %p1474_p10 }
  0x27   : > { %p1482_p2 = pnand %p1481_p8, %p1475_p6 }
  0x29   : > { %1485 = shalt.err (!%p1482_p2)
}
  0x2a   : > { %s1605_s14 = smov 64   ;;  %s1606_s21 = smov 4  }
  0x2b   : > { %1368 = dma.hbm_to_vmem [thread:$0]  (!%p1699_p11), %s1977_s1, 1024, %s196_s29, [#allocation6], %s1605_s14, %s1605_s14, %s1606_s21  }
  0x2c   : > { %p42_p1 = scmp.ge.s32.totalorder %s40_s5, 2  ;;  %s49_s6 = sadd.s32 1, %s1590_s17 }
  0x2d   : > { %p56_p2 = scmp.ne.s32.totalorder %s1590_s17, %s1586_s16  ;;  %p57_p4 = scmp.eq.s32.totalorder %s1602_s20, 0 }
  0x2e   : > { %s2006_s5 = smov (%p42_p1, %s40_s5), 0  ;;  %p1992_p8 = scmp.ne.s32.totalorder %s1986_s24, 0 }
  0x2f   : > { %p1729_p6 = por %p57_p4, %p56_p2  ;;  %s44_s8 = ssub.s32 %s1598_s19, %s2006_s5 }
  0x30   : > { %p1735_p10 = por %p1992_p8, %p56_p2  ;;  %p1378_p12 = scmp.lt.s32.totalorder %s1602_s20, 2 }
  0x31   : > { %p47_p11 = scmp.eq.s32.totalorder %s44_s8, 0  ;;  %s221_s29 = sand.u32 1, %s1590_s17  }
  0x32   : > { %s1070_s9 = sshll.u32 %s221_s29, 7  ;;  %s1140_s11 = sshll.u32 %s1598_s19, 11 }
  0x33   : > { %s1744_s10 = scalar_select %p47_p11, %s1590_s17, %s49_s6  }
  0x34   : > { %s1750_s22 = scalar_lea.hbm %s1976_s0, %s1140_s11  ;;  %s225_s24 = scalar_lea.vmem [#allocation2], %s1070_s9 }
  0x35   : > { %s234_s28 = sshll.u32 %s225_s24, 4  ;;  %p1756_p13 = pnand %p1378_p12, %p1729_p6  ;;  %s1752_s28 = int_to_ptr.vmem [resolvable:$true] %s234_s28 }
  0x36   : > { %s1760_s6 = scalar_lea.sflag [#allocation3], %s221_s29  ;;  %s1486_s12 = scalar_lea.hbm %s1750_s22, 2048 }
  0x37   : > { %p1487_p0 = scmp.ne.s32.totalorder %s1750_s22, %s1486_s12  ;;  %p1488_p3 = pneg %p1756_p13 }
  0x38   : > { %s1491_s7 = scalar_lea.hbm %s1976_s0, 4096  ;;  %p1492_p9 = scmp.lt.u32.totalorder %s1750_s22, %s1976_s0 }
  0x39   : > { %p1489_p5 = pnand %p1488_p3, %p1487_p0  ;;  %p1493_p1 = scmp.lt.u32.totalorder %s1491_s7, %s1486_s12 }
  0x3a   : > { %p1495_p4 = scmp.lt.u32.totalorder %s1486_s12, %s1750_s22 }
  0x3b   : > { %p1490_p7 = pneg %p1489_p5  ;;  %p1494_p2 = por %p1493_p1, %p1492_p9 }
  0x3d   : > { %p1496_p6 = por %p1495_p4, %p1494_p2 }
  0x3f   : > { %p1497_p8 = pnand %p1496_p6, %p1490_p7 }
  0x41   : > { %1500 = shalt.err (!%p1497_p8)
}
  0x42   : > { %s1501_s29 = scalar_lea.vmem %s1752_s28, 2048  ;;  %s1607_s9 = smov [#allocation2]  }
  0x43   : > { %p1502_p12 = scmp.ne.s32.totalorder %s1752_s28, %s1501_s29  ;;  %s1506_s11 = sshll.u32 %s1607_s9, 4  ;;  %s1507_s11 = int_to_ptr.vmem [resolvable:$false] %s1506_s11 }
  0x44   : > { %s1508_s13 = scalar_lea.vmem %s1507_s11, 4096  ;;  %p1509_p5 = scmp.lt.s32.totalorder %s1752_s28, %s1507_s11 }
  0x45   : > { %p1504_p11 = pnand %p1502_p12, %p1488_p3  ;;  %p1510_p9 = scmp.lt.s32.totalorder %s1508_s13, %s1501_s29 }
  0x47   : > { %p1505_p0 = pneg %p1504_p11  ;;  %p1511_p1 = por %p1510_p9, %p1509_p5 }
  0x49   : > { %p1512_p2 = pnand %p1511_p1, %p1505_p0 }
  0x4b   : > { %1515 = shalt.err (!%p1512_p2)
}
  0x4c   : > { %1372 = dma.hbm_to_vmem [thread:$0]  (!%p1756_p13), %s1750_s22, 2048, %s1752_s28, %s1760_s6, %s1605_s14, %s1605_s14, %s1606_s21  }
  0x4d   : > { %p1995_p3 = scmp.ne.s32.totalorder %s1989_s27, 0 }
  0x4e   : > { %s1794_s12 = sand.u32 (!%p1995_p3), 1, %s1586_s16   ;;  %p1996_p7 = scmp.ne.s32.totalorder (!%p1995_p3), %s1987_s25, 0 }
  0x4f   : > { %246 = sbr.rel (%p1995_p3) target bundleno = 386 (0x182), region = 36  ;;  %s1074_s7 = sshll.u32 (!%p1995_p3), %s1794_s12, 7 }
  0x50   : > { %s249_s24 = scalar_lea.sflag (!%p1995_p3), [#allocation3], %s1794_s12  ;;  %s1800_s8 = scalar_lea.vmem (!%p1995_p3), [#allocation2], %s1074_s7 }
  0x56   : > { %1569 = dma.done.wait (%p1996_p7), %s249_s24, 2048  }
  0x57   : > { %1571 = vsyncadd (%p1996_p7), %s249_s24, 4294965248  ;;  %p1997_p13 = scmp.ne.s32.totalorder %s1985_s23, 0 }
  0x59   : > { %1573 = dma.done.wait (%p1997_p13), [#allocation6], 1024  }
  0x5a   : > { %1575 = vsyncadd (%p1997_p13), [#allocation6], 4294966272  ;;  %v1434_v0 = vld [vmem:[#allocation5] sm:$0xff]   ;;  %v1435_v1 = vld [vmem:[#allocation5 + $0x8] sm:$0xff]   ;;  %s1858_s21 = scalar_lea.vmem [#allocation7], %s1074_s7  ;;  %s1173_s22 = sshll.u32 %s1594_s18, 11 }
  0x5b   : > { %1293 = vmatprep.subr.bf16.mxu0 %v1434_v0  ;;  %1341 = vmatprep.subr.bf16.mxu1 %v1434_v0  ;;  %v1436_v2 = vld [vmem:[#allocation5 + $0x10] sm:$0xff]   ;;  %v1437_v3 = vld [vmem:[#allocation5 + $0x18] sm:$0xff]   ;;  %v1442_v4 = vld [vmem:[%s1800_s8] sm:$0xff]   ;;  %s936_s28 = sshll.u32 %s1858_s21, 4  ;;  %s1921_s18 = scalar_lea.hbm %s1980_s4, %s1173_s22  ;;  %s1923_s28 = int_to_ptr.vmem [resolvable:$true] %s936_s28 }
  0x5c   : > { %1294 = vmatpush3.bf16.msra.mxu0 %v1434_v0  ;;  %1349 = vmatpush3.bf16.msra.mxu1 %v1434_v0  ;;  %v1443_v5 = vld [vmem:[%s1800_s8 + $0x40] sm:$0xff]   ;;  %v1439_v7 = vld [vmem:[#allocation5 + $0x28] sm:$0xff]   ;;  %v1440_v8 = vld [vmem:[#allocation5 + $0x30] sm:$0xff]   ;;  %s920_s9 = scalar_lea.sflag [#allocation4], %s1794_s12  ;;  %s1516_s11 = scalar_lea.vmem %s1923_s28, 2048 }
  0x5d   : > { %1295 = vmatprep.subr.bf16.mxu0 %v1435_v1  ;;  %1342 = vmatprep.subr.bf16.mxu1 %v1435_v1  ;;  %v1438_v6 = vld [vmem:[#allocation5 + $0x20] sm:$0xff]   ;;  %v1441_v9 = vld [vmem:[#allocation5 + $0x38] sm:$0xff]   ;;  %v1444_v10 = vld [vmem:[%s1800_s8 + $0x8] sm:$0xff]   ;;  %p1517_p4 = scmp.ne.s32.totalorder %s1923_s28, %s1516_s11  ;;  %s1608_s13 = smov [#allocation7]  }
  0x5e   : > { %1309 = vmatprep.mubr.bf16.mxu0 %v1442_v4  ;;  %1325 = vmatprep.mubr.bf16.mxu1 %v1443_v5  ;;  %v1445_v11 = vld [vmem:[%s1800_s8 + $0x48] sm:$0xff]   ;;  %v1446_v12 = vld [vmem:[%s1800_s8 + $0x10] sm:$0xff]   ;;  %v1448_v14 = vld [vmem:[%s1800_s8 + $0x18] sm:$0xff]   ;;  %s1520_s7 = sshll.u32 %s1608_s13, 4  ;;  %s1521_s7 = int_to_ptr.vmem [resolvable:$false] %s1520_s7 }
  0x5f   : > { %v1447_v13 = vld [vmem:[%s1800_s8 + $0x50] sm:$0xff]   ;;  %v1449_v15 = vld [vmem:[%s1800_s8 + $0x58] sm:$0xff]   ;;  %v1450_v16 = vld [vmem:[%s1800_s8 + $0x20] sm:$0xff]   ;;  %p1518_p6 = pnand %p1517_p4, %p1735_p10  ;;  %s1522_s24 = scalar_lea.vmem %s1521_s7, 4096 }
  0x60   : > { %1296 = vmatpush3.bf16.msra.mxu0 %v1435_v1  ;;  %1350 = vmatpush3.bf16.msra.mxu1 %v1435_v1  ;;  %v1451_v17 = vld [vmem:[%s1800_s8 + $0x60] sm:$0xff]   ;;  %v1452_v18 = vld [vmem:[%s1800_s8 + $0x28] sm:$0xff]   ;;  %v1454_v20 = vld [vmem:[%s1800_s8 + $0x30] sm:$0xff]   ;;  %p1523_p12 = scmp.lt.s32.totalorder %s1923_s28, %s1521_s7  ;;  %p1524_p11 = scmp.lt.s32.totalorder %s1522_s24, %s1516_s11 }
  0x61   : > { %1297 = vmatprep.subr.bf16.mxu0 %v1436_v2  ;;  %1343 = vmatprep.subr.bf16.mxu1 %v1436_v2  ;;  %v1453_v19 = vld [vmem:[%s1800_s8 + $0x68] sm:$0xff]   ;;  %v1455_v21 = vld [vmem:[%s1800_s8 + $0x70] sm:$0xff]   ;;  %v1456_v22 = vld [vmem:[%s1800_s8 + $0x38] sm:$0xff]   ;;  %p1519_p8 = pneg %p1518_p6 }
  0x62   : > { %v1457_v23 = vld [vmem:[%s1800_s8 + $0x78] sm:$0xff]   ;;  %v1829_v24 = vld [vmem:[%s1978_s2] ss:$0 sm:$0xff]  ;;  %p1525_p0 = por %p1524_p11, %p1523_p12 }
  0x63   : > { %v1834_v26 = vld [vmem:[%s1979_s3] ss:$0 sm:$0xff] }
  0x64   : > { %1298 = vmatpush3.bf16.msra.mxu0 %v1436_v2  ;;  %1351 = vmatpush3.bf16.msra.mxu1 %v1436_v2  ;;  %p1526_p5 = pnand %p1525_p0, %p1519_p8 }
  0x65   : > { %1299 = vmatprep.subr.bf16.mxu0 %v1437_v3  ;;  %1344 = vmatprep.subr.bf16.mxu1 %v1437_v3 }
  0x68   : > { %1300 = vmatpush3.bf16.msra.mxu0 %v1437_v3  ;;  %1352 = vmatpush3.bf16.msra.mxu1 %v1437_v3 }
  0x69   : > { %1301 = vmatprep.subr.bf16.mxu0 %v1438_v6  ;;  %1345 = vmatprep.subr.bf16.mxu1 %v1438_v6 }
  0x6c   : > { %1302 = vmatpush3.bf16.msra.mxu0 %v1438_v6  ;;  %1353 = vmatpush3.bf16.msra.mxu1 %v1438_v6 }
  0x6d   : > { %1303 = vmatprep.subr.bf16.mxu0 %v1439_v7  ;;  %1346 = vmatprep.subr.bf16.mxu1 %v1439_v7 }
  0x70   : > { %1304 = vmatpush3.bf16.msra.mxu0 %v1439_v7  ;;  %1354 = vmatpush3.bf16.msra.mxu1 %v1439_v7 }
  0x71   : > { %1305 = vmatprep.subr.bf16.mxu0 %v1440_v8  ;;  %1347 = vmatprep.subr.bf16.mxu1 %v1440_v8 }
  0x74   : > { %1306 = vmatpush3.bf16.msra.mxu0 %v1440_v8  ;;  %1355 = vmatpush3.bf16.msra.mxu1 %v1440_v8 }
  0x75   : > { %1307 = vmatprep.subr.bf16.mxu0 %v1441_v9  ;;  %1348 = vmatprep.subr.bf16.mxu1 %v1441_v9 }
  0x78   : > { %1308 = vmatpush3.bf16.msra.mxu0 %v1441_v9  ;;  %1356 = vmatpush3.bf16.msra.mxu1 %v1441_v9 }
  0x7b   : > { %1310 = vmatmul.mubr.bf16.vlgmr.msra.gmra.mrb[0].mxu0 %v1444_v10  ;;  %1326 = vmatmul.mubr.bf16.vlgmr.msra.gmra.mrb[0].mxu1 %v1445_v11 }
  0x7c   : > { %1313 = vmatprep.mubr.bf16.mxu0 %v1446_v12  ;;  %1329 = vmatprep.mubr.bf16.mxu1 %v1447_v13 }
  0x83   : > { %1314 = vmatmul.mubr.bf16.gmra.mrb[4].mxu0 %v1448_v14  ;;  %1330 = vmatmul.mubr.bf16.gmra.mrb[4].mxu1 %v1449_v15 }
  0x84   : > { %1317 = vmatprep.mubr.bf16.mxu0 %v1450_v16  ;;  %1333 = vmatprep.mubr.bf16.mxu1 %v1451_v17 }
  0x8b   : > { %1318 = vmatmul.mubr.bf16.gmra.mrb[8].mxu0 %v1452_v18  ;;  %1334 = vmatmul.mubr.bf16.gmra.mrb[8].mxu1 %v1453_v19 }
  0x8c   : > { %1321 = vmatprep.mubr.bf16.mxu0 %v1454_v20  ;;  %1337 = vmatprep.mubr.bf16.mxu1 %v1455_v21 }
  0x93   : > { %1322 = vmatmul.mubr.bf16.gmra.mrb[12].mxu0 %v1456_v22  ;;  %1338 = vmatmul.mubr.bf16.gmra.mrb[12].mxu1 %v1457_v23 }
 0x14e   : > { %v1311_v25 = vpop.f32.mrb[0].mxu0  ;;  %v1327_v27 = vpop.f32.mrb[0].mxu1 }
 0x14f   : > { %v658_v28 = vmul.f32 %v1311_v25, %v1829_v24  ;;  %v674_v29 = vmul.f32 %v1327_v27, %v1829_v24  ;;  %v522_v30 = vpop.f32.mrb[1].mxu0  ;;  %v586_v31 = vpop.f32.mrb[1].mxu1 }
 0x150   : > { %v656_v32 = vmul.f32 %v1829_v24, %v522_v30  ;;  %v672_v33 = vmul.f32 %v1829_v24, %v586_v31  ;;  %v1312_v34 = vpop.f32.mrb[2].mxu0  ;;  %v1328_v35 = vpop.f32.mrb[2].mxu1 }
 0x151   : > { %v697_v36 = vadd.f32 %v1834_v26, %v658_v28  ;;  %v713_v37 = vadd.f32 %v1834_v26, %v674_v29  ;;  %v659_v38 = vmul.f32 %v1312_v34, %v1829_v24  ;;  %v675_v39 = vmul.f32 %v1328_v35, %v1829_v24  ;;  %v525_v40 = vpop.f32.mrb[3].mxu0  ;;  %v589_v41 = vpop.f32.mrb[3].mxu1 }
 0x152   : > { %v695_v42 = vadd.f32 %v1834_v26, %v656_v32  ;;  %v711_v43 = vadd.f32 %v1834_v26, %v672_v33  ;;  %v657_v44 = vmul.f32 %v1829_v24, %v525_v40  ;;  %v673_v45 = vmul.f32 %v1829_v24, %v589_v41 }
 0x153   : > { %v698_v46 = vadd.f32 %v1834_v26, %v659_v38  ;;  %v714_v47 = vadd.f32 %v1834_v26, %v675_v39  ;;  %v729_v50 = vmax.f32 %v697_v36, 0.0  ;;  %v745_v51 = vmax.f32 %v713_v37, 0.0 }
 0x154   : > { %v696_v48 = vadd.f32 %v1834_v26, %v657_v44  ;;  %v712_v49 = vadd.f32 %v1834_v26, %v673_v45  ;;  %v727_v54 = vmax.f32 %v695_v42, 0.0  ;;  %v743_v55 = vmax.f32 %v711_v43, 0.0 }
 0x155   : > { %v730_v52 = vmax.f32 %v698_v46, 0.0  ;;  %v746_v53 = vmax.f32 %v714_v47, 0.0 }
 0x156   : > { %v728_v56 = vmax.f32 %v696_v48, 0.0  ;;  %v744_v57 = vmax.f32 %v712_v49, 0.0  ;;  %v1315_v58 = vpop.f32.mrb[4].mxu0  ;;  %v1331_v59 = vpop.f32.mrb[4].mxu1 }
 0x157   : > { %v1182_v60 = vpack.c.bf16 %v730_v52, %v729_v50  ;;  %v1222_v61 = vpack.c.bf16 %v746_v53, %v745_v51  ;;  %v662_v62 = vmul.f32 %v1315_v58, %v1829_v24  ;;  %v678_v63 = vmul.f32 %v1331_v59, %v1829_v24  ;;  %v538_v0 = vpop.f32.mrb[5].mxu0  ;;  %v602_v1 = vpop.f32.mrb[5].mxu1 }
 0x158   : > { %v1177_v2 = vpack.c.bf16 %v728_v56, %v727_v54  ;;  %v1217_v3 = vpack.c.bf16 %v744_v57, %v743_v55  ;;  %v660_v4 = vmul.f32 %v1829_v24, %v538_v0  ;;  %v676_v5 = vmul.f32 %v1829_v24, %v602_v1  ;;  %v1316_v6 = vpop.f32.mrb[6].mxu0  ;;  %v1332_v7 = vpop.f32.mrb[6].mxu1 }
 0x159   : > { %1254 = vst [vmem:[%s1858_s21 + $0x8] sm:$0xff] %v1182_v60   ;;  %1262 = vst [vmem:[%s1858_s21 + $0x48] sm:$0xff] %v1222_v61   ;;  %v701_v8 = vadd.f32 %v1834_v26, %v662_v62  ;;  %v717_v9 = vadd.f32 %v1834_v26, %v678_v63  ;;  %v663_v10 = vmul.f32 %v1316_v6, %v1829_v24  ;;  %v541_v12 = vpop.f32.mrb[7].mxu0  ;;  %v605_v13 = vpop.f32.mrb[7].mxu1 }
 0x15a   : > { %v679_v11 = vmul.f32 %v1332_v7, %v1829_v24  ;;  %1178 = vst [vmem:[%s1858_s21] sm:$0xff] %v1177_v2   ;;  %1261 = vst [vmem:[%s1858_s21 + $0x40] sm:$0xff] %v1217_v3   ;;  %v699_v14 = vadd.f32 %v1834_v26, %v660_v4  ;;  %v715_v15 = vadd.f32 %v1834_v26, %v676_v5 }
 0x15b   : > { %v661_v16 = vmul.f32 %v1829_v24, %v541_v12  ;;  %v677_v17 = vmul.f32 %v1829_v24, %v605_v13  ;;  %v702_v18 = vadd.f32 %v1834_v26, %v663_v10  ;;  %v733_v22 = vmax.f32 %v701_v8, 0.0 }
 0x15c   : > { %v718_v19 = vadd.f32 %v1834_v26, %v679_v11  ;;  %v749_v23 = vmax.f32 %v717_v9, 0.0  ;;  %v731_v28 = vmax.f32 %v699_v14, 0.0  ;;  %v747_v29 = vmax.f32 %v715_v15, 0.0 }
 0x15d   : > { %v700_v20 = vadd.f32 %v1834_v26, %v661_v16  ;;  %v716_v21 = vadd.f32 %v1834_v26, %v677_v17  ;;  %v734_v25 = vmax.f32 %v702_v18, 0.0 }
 0x15e   : > { %v750_v27 = vmax.f32 %v718_v19, 0.0  ;;  %v1319_v32 = vpop.f32.mrb[8].mxu0  ;;  %v1335_v33 = vpop.f32.mrb[8].mxu1 }
 0x15f   : > { %v732_v30 = vmax.f32 %v700_v20, 0.0  ;;  %v748_v31 = vmax.f32 %v716_v21, 0.0  ;;  %v1192_v34 = vpack.c.bf16 %v734_v25, %v733_v22  ;;  %v666_v36 = vmul.f32 %v1319_v32, %v1829_v24  ;;  %v554_v38 = vpop.f32.mrb[9].mxu0  ;;  %v618_v39 = vpop.f32.mrb[9].mxu1 }
 0x160   : > { %v1232_v35 = vpack.c.bf16 %v750_v27, %v749_v23  ;;  %v682_v37 = vmul.f32 %v1335_v33, %v1829_v24  ;;  %v664_v42 = vmul.f32 %v1829_v24, %v554_v38  ;;  %v680_v43 = vmul.f32 %v1829_v24, %v618_v39  ;;  %v1320_v44 = vpop.f32.mrb[10].mxu0  ;;  %v1336_v45 = vpop.f32.mrb[10].mxu1 }
 0x161   : > { %v1187_v40 = vpack.c.bf16 %v732_v30, %v731_v28  ;;  %v1227_v41 = vpack.c.bf16 %v748_v31, %v747_v29  ;;  %1256 = vst [vmem:[%s1858_s21 + $0x18] sm:$0xff] %v1192_v34   ;;  %v705_v46 = vadd.f32 %v1834_v26, %v666_v36  ;;  %v667_v48 = vmul.f32 %v1320_v44, %v1829_v24  ;;  %v557_v50 = vpop.f32.mrb[11].mxu0  ;;  %v621_v51 = vpop.f32.mrb[11].mxu1 }
 0x162   : > { %1264 = vst [vmem:[%s1858_s21 + $0x58] sm:$0xff] %v1232_v35   ;;  %v721_v47 = vadd.f32 %v1834_v26, %v682_v37  ;;  %v683_v49 = vmul.f32 %v1336_v45, %v1829_v24  ;;  %v703_v52 = vadd.f32 %v1834_v26, %v664_v42  ;;  %v719_v53 = vadd.f32 %v1834_v26, %v680_v43 }
 0x163   : > { %1255 = vst [vmem:[%s1858_s21 + $0x10] sm:$0xff] %v1187_v40   ;;  %1263 = vst [vmem:[%s1858_s21 + $0x50] sm:$0xff] %v1227_v41   ;;  %v665_v54 = vmul.f32 %v1829_v24, %v557_v50  ;;  %v681_v55 = vmul.f32 %v1829_v24, %v621_v51  ;;  %v706_v56 = vadd.f32 %v1834_v26, %v667_v48  ;;  %v737_v60 = vmax.f32 %v705_v46, 0.0 }
 0x164   : > { %v722_v57 = vadd.f32 %v1834_v26, %v683_v49  ;;  %v753_v61 = vmax.f32 %v721_v47, 0.0  ;;  %v735_v0 = vmax.f32 %v703_v52, 0.0  ;;  %v751_v1 = vmax.f32 %v719_v53, 0.0 }
 0x165   : > { %v704_v58 = vadd.f32 %v1834_v26, %v665_v54  ;;  %v720_v59 = vadd.f32 %v1834_v26, %v681_v55  ;;  %v738_v62 = vmax.f32 %v706_v56, 0.0 }
 0x166   : > { %v754_v63 = vmax.f32 %v722_v57, 0.0  ;;  %v1323_v4 = vpop.f32.mrb[12].mxu0  ;;  %v1339_v5 = vpop.f32.mrb[12].mxu1 }
 0x167   : > { %v736_v2 = vmax.f32 %v704_v58, 0.0  ;;  %v752_v3 = vmax.f32 %v720_v59, 0.0  ;;  %v1202_v6 = vpack.c.bf16 %v738_v62, %v737_v60  ;;  %v670_v8 = vmul.f32 %v1323_v4, %v1829_v24  ;;  %v570_v10 = vpop.f32.mrb[13].mxu0  ;;  %v634_v11 = vpop.f32.mrb[13].mxu1 }
 0x168   : > { %v1242_v7 = vpack.c.bf16 %v754_v63, %v753_v61  ;;  %v686_v9 = vmul.f32 %v1339_v5, %v1829_v24  ;;  %v668_v14 = vmul.f32 %v1829_v24, %v570_v10  ;;  %v684_v15 = vmul.f32 %v1829_v24, %v634_v11  ;;  %v1324_v16 = vpop.f32.mrb[14].mxu0  ;;  %v1340_v17 = vpop.f32.mrb[14].mxu1 }
 0x169   : > { %v1197_v12 = vpack.c.bf16 %v736_v2, %v735_v0  ;;  %v1237_v13 = vpack.c.bf16 %v752_v3, %v751_v1  ;;  %1258 = vst [vmem:[%s1858_s21 + $0x28] sm:$0xff] %v1202_v6   ;;  %v709_v18 = vadd.f32 %v1834_v26, %v670_v8  ;;  %v671_v20 = vmul.f32 %v1324_v16, %v1829_v24  ;;  %v573_v22 = vpop.f32.mrb[15].mxu0  ;;  %v637_v23 = vpop.f32.mrb[15].mxu1 }
 0x16a   : > { %1266 = vst [vmem:[%s1858_s21 + $0x68] sm:$0xff] %v1242_v7   ;;  %v725_v19 = vadd.f32 %v1834_v26, %v686_v9  ;;  %v687_v21 = vmul.f32 %v1340_v17, %v1829_v24  ;;  %v707_v25 = vadd.f32 %v1834_v26, %v668_v14  ;;  %v723_v27 = vadd.f32 %v1834_v26, %v684_v15 }
 0x16b   : > { %1257 = vst [vmem:[%s1858_s21 + $0x20] sm:$0xff] %v1197_v12   ;;  %1265 = vst [vmem:[%s1858_s21 + $0x60] sm:$0xff] %v1237_v13   ;;  %v669_v28 = vmul.f32 %v1829_v24, %v573_v22  ;;  %v685_v29 = vmul.f32 %v1829_v24, %v637_v23  ;;  %v710_v30 = vadd.f32 %v1834_v26, %v671_v20  ;;  %v741_v34 = vmax.f32 %v709_v18, 0.0 }
 0x16c   : > { %v726_v31 = vadd.f32 %v1834_v26, %v687_v21  ;;  %v757_v35 = vmax.f32 %v725_v19, 0.0  ;;  %v739_v24 = vmax.f32 %v707_v25, 0.0  ;;  %v755_v38 = vmax.f32 %v723_v27, 0.0 }
 0x16d   : > { %v708_v32 = vadd.f32 %v1834_v26, %v669_v28  ;;  %v724_v33 = vadd.f32 %v1834_v26, %v685_v29  ;;  %v742_v36 = vmax.f32 %v710_v30, 0.0 }
 0x16e   : > { %v758_v37 = vmax.f32 %v726_v31, 0.0 }
 0x16f   : > { %v740_v39 = vmax.f32 %v708_v32, 0.0  ;;  %v756_v40 = vmax.f32 %v724_v33, 0.0  ;;  %v1212_v41 = vpack.c.bf16 %v742_v36, %v741_v34 }
 0x170   : > { %v1252_v42 = vpack.c.bf16 %v758_v37, %v757_v35 }
 0x171   : > { %v1207_v26 = vpack.c.bf16 %v740_v39, %v739_v24  ;;  %v1247_v43 = vpack.c.bf16 %v756_v40, %v755_v38  ;;  %1260 = vst [vmem:[%s1858_s21 + $0x38] sm:$0xff] %v1212_v41  }
 0x172   : > { %1268 = vst [vmem:[%s1858_s21 + $0x78] sm:$0xff] %v1252_v42  }
 0x173   : > { %1259 = vst [vmem:[%s1858_s21 + $0x30] sm:$0xff] %v1207_v26   ;;  %1267 = vst [vmem:[%s1858_s21 + $0x70] sm:$0xff] %v1247_v43  }
 0x174   : > { %1529 = shalt.err (!%p1526_p5)
}
 0x175   : > { %s1530_s8 = scalar_lea.hbm %s1921_s18, 2048  ;;  %s1534_s27 = scalar_lea.hbm %s1980_s4, 4096 }
 0x176   : > { %p1531_p9 = scmp.ne.s32.totalorder %s1921_s18, %s1530_s8  ;;  %p1535_p3 = scmp.lt.u32.totalorder %s1921_s18, %s1980_s4 }
 0x177   : > { %p1536_p7 = scmp.lt.u32.totalorder %s1534_s27, %s1530_s8  ;;  %p1538_p4 = scmp.lt.u32.totalorder %s1530_s8, %s1921_s18 }
 0x178   : > { %p1532_p1 = pnand %p1531_p9, %p1735_p10 }
 0x179   : > { %p1537_p13 = por %p1536_p7, %p1535_p3 }
 0x17a   : > { %p1533_p2 = pneg %p1532_p1 }
 0x17b   : > { %p1539_p6 = por %p1538_p4, %p1537_p13 }
 0x17d   : > { %p1540_p8 = pnand %p1539_p6, %p1533_p2 }
 0x17f   : > { %1543 = shalt.err (!%p1540_p8)
}
 0x180   : > { %s1609_s22 = smov 64   ;;  %s1610_s6 = smov 4  }
 0x181   : > { %1363 = dma.vmem_to_hbm [thread:$0]  (%p1735_p10), %s1923_s28, 2048, %s1921_s18, %s920_s9, %s1609_s22, %s1609_s22, %s1610_s6  }
 0x182 PF: > { %s951_s29 = sand.u32 1, %s1582_s15   ;;  %p1998_p12 = scmp.ne.s32.totalorder %s1988_s26, 0 }
 0x183   : > { %p1999_p11 = scmp.ge.s32.totalorder %s1602_s20, 2  ;;  %s952_s11 = scalar_lea.sflag [#allocation4], %s951_s29 }
 0x185   : > { %p1374_p0 = pnand %p1999_p11, %p1998_p12 }
 0x187   : > { %1577 = dma.done.wait (!%p1374_p0), %s952_s11, 2048  }
 0x188   : > { %1579 = vsyncadd (!%p1374_p0), %s952_s11, 4294965248  ;;  %s21_s20 = sadd.s32 1, %s1602_s20   ;;  %s2000_s15 = smov %s1586_s16 }
 0x189   : > { %p18_p5 = scmp.ge.s32.totalorder %s21_s20, 4   ;;  %s2001_s16 = smov %s1590_s17 }
 0x18a   : > { %s2002_s17 = smov %s1744_s10  ;;  %s2003_s18 = smov %s1598_s19 }
 0x18b   : > { %s2004_s19 = smov %s2006_s5  ;;  %20 = sbr.rel (!%p18_p5) target bundleno = 7 (0x7), region = 92 }
 0x192   :  { %957 = vsyncpa [#allocation3], 1 }
 0x193   :  { %959 = vsyncpa [#allocation3 + $0x1], 1 }
 0x194   :  { %960 = vsyncpa [#allocation6], 1 }
 0x195   :  { %961 = vsyncpa [#allocation4], 1 }
 0x196   :  { %963 = vsyncpa [#allocation4 + $0x1], 1 }

</bundles_post_ra>
